<compile_context>
chip_gen: v5e
topology: v5e:2x2
jax: 0.10.0
libtpu: 0.0.40
codegen_flags: <defaults>
</compile_context>

<pallas_src>
import functools

import jax
import jax.numpy as jnp
from jax.experimental import pallas as pl
from jax.experimental.pallas import tpu as pltpu


def _round_up(a, b):
    return (a + b - 1) // b * b


def _int_pow(x, n: int):
    """x**n for a static positive int n via unrolled exponentiation-by-squaring.

    Pure VPU multiplies -- no EUP transcendentals."""
    assert n >= 1
    acc = None
    base = x
    while n:
        if n & 1:
            acc = base if acc is None else acc * base
        n >>= 1
        if n:
            base = base * base
    return acc


def _gem_kernel(p_ref, x_ref, o_ref, *, eps, inv_hw, static_int_p,
                nc_total, tile_rows, mask_ragged):
    # p_ref: (1,) f32 in SMEM (scalar-prefetched learnable exponent)
    # x_ref: (TM, HW) input block in VMEM (original dtype; upcast here)
    # o_ref: (1, TM)  lane-dense output block in VMEM
    x = x_ref[...].astype(jnp.float32)
    xc = jnp.maximum(x, eps)                      # clamp(min=eps)

    if mask_ragged:
        # Last grid step reads past the end of the NC axis; those rows hold
        # unspecified VMEM data.  Force them to a benign constant so no
        # NaN/Inf is ever produced (results are discarded by the wrapper).
        rem = nc_total - pl.program_id(0) * tile_rows
        row_ids = jax.lax.broadcasted_iota(jnp.int32, (tile_rows, 1), 0)
        xc = jnp.where(row_ids < rem, xc, 1.0)

    if static_int_p is not None:
        # Fast path (frozen integer p): pow on the VPU, zero EUP ops/elem.
        xp = _int_pow(xc, static_int_p)
        p = jnp.float32(static_int_p)
    else:
        # General learnable-p path: x**p = exp(p * log(x)) (2 EUP ops/elem).
        p = p_ref[0]
        xp = jnp.exp(p * jnp.log(xc))

    # Row-sum on the (otherwise idle) MXU: contracting xp's lane (HW) axis
    # against a slab of ones lands the per-row sums lane-major, so the output
    # store below is one dense vst rather than masked (TM, 1) stores.
    ones = jnp.ones((8, xp.shape[-1]), jnp.float32)   # 8 sublanes: MXU-friendly M
    sums = jax.lax.dot_general(
        ones, xp,
        dimension_numbers=(((1,), (1,)), ((), ())),
        preferred_element_type=jnp.float32,
        precision=jax.lax.Precision.HIGHEST,          # keep ~f32 accuracy of the sum
    )                                                  # (8, TM); rows identical
    m = sums[0:1, :] * inv_hw                          # mean over the full H*W window
    out = jnp.exp(jnp.log(m) / p)                      # (.)**(1/p); only TM elements
    o_ref[...] = out.astype(o_ref.dtype)


def gem_pallas(x, p, eps=1e-6, *, static_int_p=None, block_rows=None):
    """GeM pooling. x: (N, C, H, W); p: (1,) exponent. Returns (N, C, 1, 1).

    static_int_p: optional Python int. If given, the caller promises the
    runtime value of p equals static_int_p; the elementwise pow then uses
    multiplies only. block_rows: override tile rows (testing / tuning).
    """
    N, C, H, W = x.shape
    NC, HW = N * C, H * W
    x2d = x.reshape(NC, HW)

    in_bytes = jnp.dtype(x.dtype).itemsize
    # Sublane packing multiple for the input dtype (f32: 8, bf16: 16, int8: 32).
    row_mult = max(8, 32 // in_bytes)

    if block_rows is None:
        # ~2 MiB input blocks: large enough to sit near the HBM roofline
        # (per-grid-step overhead ~0.35us), small enough that 2x double-buffer
        # plus f32 compute temporaries fit v7x's VMEM with headroom.
        block_rows = max(1, (2 * 1024 * 1024) // (HW * in_bytes))
    tm = max(row_mult, min(int(block_rows), 2048))
    if tm >= 128:
        tm -= tm % 128          # keep the lane-dense output row 128-aligned
    tm -= tm % row_mult
    tm = max(row_mult, tm)
    if tm >= NC:
        tm = NC                 # single full-array block: no ragged handling

    num_tiles = pl.cdiv(NC, tm)
    mask_ragged = (NC % tm) != 0   # last block is partial -> mask its dead rows

    kernel = functools.partial(
        _gem_kernel, eps=float(eps), inv_hw=1.0 / float(HW),
        static_int_p=static_int_p, nc_total=NC, tile_rows=tm,
        mask_ragged=mask_ragged)

    trans = (2 * NC if static_int_p is not None else 2 * NC * (HW + 1))
    cost = pl.CostEstimate(
        flops=4 * NC * HW,
        transcendentals=trans,
        bytes_accessed=NC * HW * in_bytes + NC * in_bytes + 4,
    )

    out2d = pl.pallas_call(
        kernel,
        out_shape=jax.ShapeDtypeStruct((num_tiles, tm), x.dtype),
        grid_spec=pltpu.PrefetchScalarGridSpec(
            num_scalar_prefetch=1,                   # p -> SMEM, first kernel arg
            grid=(num_tiles,),
            in_specs=[pl.BlockSpec((tm, HW), lambda i, p_ref: (i, 0))],
            out_specs=pl.BlockSpec((1, tm), lambda i, p_ref: (i, 0)),
        ),
        compiler_params=pltpu.CompilerParams(
            dimension_semantics=("parallel",),       # NC rows are independent
            vmem_limit_bytes=32 * 1024 * 1024,       # explicit; safe on v7x (64 MiB phys)
        ),
        cost_estimate=cost,
    )(jnp.asarray(p, jnp.float32).reshape(1), x2d)

    return out2d.reshape(-1)[:NC].reshape(N, C, 1, 1)


def gem_ref(x, p, eps=1e-6):
    """Pure-JAX reference mirroring the PyTorch forward."""
    xc = jnp.maximum(x.astype(jnp.float32), eps)
    pv = jnp.asarray(p, jnp.float32).reshape(-1)[0]
    pooled = jnp.mean(xc ** pv, axis=(2, 3), keepdims=True)
    return (pooled ** (1.0 / pv)).astype(x.dtype)


if __name__ == "__main__":
    key = jax.random.PRNGKey(0)
    eps = 1e-6
    # Deterministic parameter init, as in GeM.__init__: p = ones(1) * 3
    p = jnp.ones((1,), dtype=jnp.float32) * 3.0

    k1, k2, k3, k4 = jax.random.split(key, 4)

    # 1) General (traced-p, exp/log) path, f32, single full-array block.
    x1 = jax.random.normal(k1, (2, 4, 16, 16), dtype=jnp.float32)
    out1 = gem_pallas(x1, p, eps)
    jax.block_until_ready(out1)
    ref1 = gem_ref(x1, p, eps)
    assert out1.shape == (2, 4, 1, 1), out1.shape
    assert jnp.allclose(out1, ref1, rtol=1e-3, atol=1e-5), (
        "general-path mismatch", float(jnp.max(jnp.abs(out1 - ref1))))

    # 2) Static integer-p fast path (VPU pow), ragged multi-tile grid
    #    (NC=20, block_rows=8 -> 3 tiles, last block partial; no input pad copy,
    #    dead rows masked in-kernel and sliced off).
    x2 = jax.random.normal(k2, (2, 10, 16, 16), dtype=jnp.float32)
    out2 = gem_pallas(x2, p, eps, static_int_p=3, block_rows=8)
    jax.block_until_ready(out2)
    ref2 = gem_ref(x2, p, eps)
    assert out2.shape == (2, 10, 1, 1), out2.shape
    assert jnp.allclose(out2, ref2, rtol=1e-3, atol=1e-5), (
        "fast-path mismatch", float(jnp.max(jnp.abs(out2 - ref2))))

    # 3) Narrow input dtype stays narrow in HBM (bf16 in, f32 compute inside).
    x3 = jax.random.normal(k3, (2, 4, 16, 16), dtype=jnp.bfloat16)
    out3 = gem_pallas(x3, p, eps)
    jax.block_until_ready(out3)
    ref3 = gem_ref(x3, p, eps)
    assert out3.shape == (2, 4, 1, 1) and out3.dtype == jnp.bfloat16
    assert jnp.allclose(out3.astype(jnp.float32), ref3.astype(jnp.float32),
                        rtol=2e-2, atol=1e-3), (
        "bf16 mismatch",
        float(jnp.max(jnp.abs(out3.astype(jnp.float32) - ref3.astype(jnp.float32)))))

    # 4) Multi-tile, 128-aligned, non-ragged grid (NC=512, tm=128 -> 4 tiles),
    #    exercising the lane-dense unmasked output stores + parallel semantics.
    x4 = jax.random.normal(k4, (2, 256, 8, 8), dtype=jnp.float32)
    out4 = gem_pallas(x4, p, eps, block_rows=128)
    jax.block_until_ready(out4)
    ref4 = gem_ref(x4, p, eps)
    assert out4.shape == (2, 256, 1, 1), out4.shape
    assert jnp.allclose(out4, ref4, rtol=1e-3, atol=1e-5), (
        "multi-tile mismatch", float(jnp.max(jnp.abs(out4 - ref4))))

    print("KERNEL_OK")
</pallas_src>

<mosaic_0001>
module attributes {stable_mosaic.version = 11 : i64} {
  func.func @_gem_kernel(%arg0: i32, %arg1: memref<1xf32, #tpu.memory_space<smem>>, %arg2: memref<8x256xf32, #tpu.memory_space<vmem>>, %arg3: memref<1x8xf32, #tpu.memory_space<vmem>>) attributes {dimension_semantics = [#tpu.dimension_semantics<parallel>], iteration_bounds = array<i64: 1>, scalar_prefetch = 1 : i64, scratch_operands = 0 : i64, tpu.core_type = #tpu.core_type<tc>, window_params = [{transform_indices = @transform_0, window_bounds = array<i64: 8, 256>}, {transform_indices = @transform_1, window_bounds = array<i64: 1, 8>}]} {
    %c0 = arith.constant 0 : index
    %c0_0 = arith.constant 0 : index
    %0 = vector.load %arg2[%c0, %c0_0] : memref<8x256xf32, #tpu.memory_space<vmem>>, vector<8x256xf32>
    %cst = arith.constant 9.99999997E-7 : f32
    %1 = vector.broadcast %cst : f32 to vector<8x256xf32>
    %2 = arith.maximumf %0, %1 : vector<8x256xf32>
    %c0_1 = arith.constant 0 : index
    %3 = memref.load %arg1[%c0_1] : memref<1xf32, #tpu.memory_space<smem>>
    %4 = math.log %2 : vector<8x256xf32>
    %5 = vector.broadcast %3 : f32 to vector<8x256xf32>
    %6 = arith.mulf %5, %4 : vector<8x256xf32>
    %7 = math.exp %6 : vector<8x256xf32>
    %cst_2 = arith.constant 1.000000e+00 : f32
    %8 = vector.broadcast %cst_2 : f32 to vector<8x256xf32>
    %cst_3 = arith.constant dense<0.000000e+00> : vector<8x8xf32>
    %9 = tpu.matmul %8, %7, %cst_3 {dimension_numbers = #tpu.dot_dimension_numbers<[1], [1], [0], [0], [0, 0, 1, 0], [], []>, precision = #tpu.contract_precision<fp32>} : vector<8x256xf32>, vector<8x256xf32>, vector<8x8xf32> -> vector<8x8xf32>
    %10 = vector.extract_strided_slice %9 {offsets = [0, 0], sizes = [1, 8], strides = [1, 1]} : vector<8x8xf32> to vector<1x8xf32>
    %cst_4 = arith.constant 3.906250e-03 : f32
    %11 = vector.broadcast %cst_4 : f32 to vector<1x8xf32>
    %12 = arith.mulf %10, %11 : vector<1x8xf32>
    %13 = math.log %12 : vector<1x8xf32>
    %14 = vector.broadcast %3 : f32 to vector<1x8xf32>
    %15 = arith.divf %13, %14 : vector<1x8xf32>
    %16 = math.exp %15 : vector<1x8xf32>
    %c0_5 = arith.constant 0 : index
    %c0_6 = arith.constant 0 : index
    %17 = vector.load %arg3[%c0_5, %c0_6] : memref<1x8xf32, #tpu.memory_space<vmem>>, vector<1x8xf32>
    tpu.vector_store %arg3[%c0_5, %c0_6], %16 {strides = array<i32>} : memref<1x8xf32, #tpu.memory_space<vmem>>, vector<1x8xf32>,
    return
  }
  func.func @transform_0(%arg0: i32, %arg1: memref<1xf32, #tpu.memory_space<smem>>) -> (i32, i32) {
    %c0_i32 = arith.constant 0 : i32
    %c0_i32_0 = arith.constant 0 : i32
    return %arg0, %c0_i32 : i32, i32
  }
  func.func @transform_1(%arg0: i32, %arg1: memref<1xf32, #tpu.memory_space<smem>>) -> (i32, i32) {
    %c0_i32 = arith.constant 0 : i32
    %c0_i32_0 = arith.constant 0 : i32
    return %arg0, %c0_i32 : i32, i32
  }
}

</mosaic_0001>

<bundles_post_ra>
// kernel: tpu_custom_call.1
= control target key start
LH: loop header
LB: loop body
LE: loop exit
PB: predicated region body
PF: predicated region fallthrough
CT: control target
= control target key end

     0   :  { %8 = vsyncpa [#allocation5], 0  ;;  %s453_s0 = inlined_call_operand.<no memory space> [shape: f32[1], index: 0, kind: input, shape index: {}]   ;;  %s454_s1 = inlined_call_operand.hbm [shape: f32[8,256], index: 1, kind: input, shape index: {}]   ;;  %s455_s2 = inlined_call_operand.hbm [shape: f32[1,8], index: 2, kind: output, shape index: {}]  }
   0x1   :  { %9 = vsyncpa [#allocation6], 0  ;;  %s15_s11 = sshll.u32 %s454_s1, 4  ;;  %s416_s12 = smov [#allocation4]   ;;  %s16_s11 = int_to_ptr.hbm [resolvable:$true] %s15_s11 }
   0x2   :  { %s17_s13 = sshll.u32 %s416_s12, 4  ;;  %s18_s13 = int_to_ptr.vmem [resolvable:$true] %s17_s13 }
   0x3   :  { %20 = dma.hbm_to_vmem [thread:$0]  %s16_s11, 256, %s18_s13, [#allocation5]  }
   0x4   :  { %412 = dma.done.wait [#allocation5], 256  }
   0x5   :  { %413 = vsyncadd [#allocation5], 4294967040  ;;  %v25_v0 = vld [vmem:[#allocation4] sm:$0xff]  ;;  %v26_v1 = vld [vmem:[#allocation4 + $0x8] sm:$0xff]  ;;  %v441_v5 = vstv %s453_s0  ;;  %v417_v20 = vmov 0.0   ;;  %v418_v26 = vmov 1.0  }
   0x6   :  { %v27_v2 = vmax.f32 %v25_v0, 1e-06  ;;  %v28_v3 = vmax.f32 %v26_v1, 1e-06  ;;  %vm315_vm0 = vweird.f32 %v441_v5  ;;  %v321_v55 = vand.u32 2147483648, %v441_v5  ;;  %s419_s0 = smov [#allocation7]  }
   0x7   :  { %v319_v57 = vand.u32 2147483647, %v441_v5  ;;  %s334_s1 = sshll.u32 %s419_s0, 4  ;;  %s336_s18 = sshll.u32 %s455_s2, 4  ;;  %vm327_vm4 = vcmask 57344   ;;  %s335_s1 = int_to_ptr.vmem [resolvable:$true] %s334_s1  ;;  %s337_s18 = int_to_ptr.hbm [resolvable:$true] %s336_s18 }
   0x8   :  { %350 = vlog2.f32 %v27_v2  ;;  %v322_v58 = vor.u32 1.1754944e-38, %v321_v55 }
   0x9   :  { %352 = vlog2.f32 %v28_v3  ;;  %vm320_vm3 = vcmp.eq.f32.partialorder %v319_v57, 8.507059e+37 }
   0xe   :  { %v351_v4 = vpop.eup %350 }
   0xf   :  { %v353_v6 = vpop.eup %352  ;;  %v31_v7 = vmul.f32 0.6931472, %v351_v4 }
  0x10   :  { %v33_v8 = vmul.f32 0.6931472, %v353_v6 }
  0x11   :  { %v35_v9 = vmul.f32 %v441_v5, %v31_v7 }
  0x12   :  { %v36_v10 = vmul.f32 %v441_v5, %v33_v8 }
  0x13   :  { %v37_v11 = vmul.f32 1.442695, %v35_v9 }
  0x14   :  { %v39_v12 = vmul.f32 1.442695, %v36_v10 }
  0x15   :  { %354 = vpow2.f32 %v37_v11 }
  0x16   :  { %356 = vpow2.f32 %v39_v12 }
  0x17   :  { %358 = vrcp.f32 %v441_v5 }
  0x1b   :  { %v355_v13 = vpop.eup %354 }
  0x1c   :  { %v357_v14 = vpop.eup %356  ;;  %v56_v15 = vand.u32 4294901760, %v355_v13 }
  0x1d   :  { %v189_v16 = vand.u32 4294901760, %v357_v14  ;;  %v359_v39 = vpop.eup %358 }
  0x1e   :  { %v78_v17 = vsub.f32 %v355_v13, %v56_v15  ;;  %57 = vmatpush.xpose.msra.mxu0 %v56_v15  ;;  %125 = vmatpush.xpose.msra.mxu3 %v56_v15  ;;  %v311_v43 = vmul.f32 %v359_v39, %v441_v5  ;;  %vm316_vm1 = vweird.f32 %v359_v39 }
  0x1f   :  { %v211_v18 = vsub.f32 %v357_v14, %v189_v16  ;;  %vm317_vm2 = vmor %vm315_vm0, %vm316_vm1 }
  0x20   :  { %104 = vmatpush.xpose.msra.mxu2 %v78_v17  ;;  %v79_v19 = vand.u32 4294901760, %v78_v17  ;;  %v312_v48 = vsub.f32 1.0, %v311_v43 }
  0x21   :  { %58 = vmatmul.f32.vlgmr.msra.gmra.mxu0 %v417_v20  ;;  %v212_v21 = vand.u32 4294901760, %v211_v18  ;;  %126 = vmatmul.f32.vlgmr.msra.gmra.mxu3 %v417_v20 }
  0x22   :  { %v80_v22 = vsub.f32 %v78_v17, %v79_v19  ;;  %148 = vmatpush.xpose.msrb.mxu0 %v79_v19  ;;  %v313_v52 = vmul.f32 %v359_v39, %v312_v48 }
  0x23   :  { %105 = vmatmul.f32.vlgmr.msra.gmra.mxu2 %v417_v20  ;;  %v213_v23 = vsub.f32 %v211_v18, %v212_v21 }
  0x24   :  { %190 = vmatpush.xpose.msrb.mxu2 %v189_v16  ;;  %v81_v24 = vand.u32 4294901760, %v80_v22  ;;  %v314_v56 = vadd.f32 %v359_v39, %v313_v52 }
  0x25   :  { %v214_v25 = vand.u32 4294901760, %v213_v23 }
  0x26   :  { %237 = vmatpush.xpose.msra.mxu0 %v211_v18  ;;  %82 = vmatpush.xpose.msra.mxu1 %v81_v24  ;;  %v318_v59 = vsel %vm317_vm2, %v359_v39, %v314_v56 }
  0x27   :  { %215 = vmatpush.xpose.msrb.mxu3 %v214_v25  ;;  %v323_v61 = vsel %vm320_vm3, %v322_v58, %v318_v59 }
  0x28   :  { %281 = vmatpush.xpose.msra.mxu2 %v212_v21 }
  0x29   :  { %83 = vmatmul.f32.vlgmr.msra.gmra.mxu1 %v418_v26  ;;  %149 = vmatmul.f32.vlgmr.msrb.gmra.mxu0 %v418_v26 }
  0x2a   :  { %169 = vmatpush.xpose.msrb.mxu1 %v56_v15  ;;  %216 = vmatmul.f32.vlgmr.msrb.gmra.mxu3 %v418_v26 }
  0x2b   :  { %302 = vmatpush.xpose.msra.mxu3 %v189_v16  ;;  %191 = vmatmul.f32.vlgmr.msrb.gmra.mxu2 %v417_v20 }
  0x2e   :  { %258 = vmatpush.xpose.msra.mxu1 %v189_v16 }
  0x31   :  { %170 = vmatmul.f32.vlgmr.msrb.gmra.mxu1 %v418_v26  ;;  %238 = vmatmul.f32.vlgmr.msra.gmra.mxu0 %v417_v20 }
  0x32   :  { %303 = vmatmul.f32.vlgmr.msra.gmra.mxu3 %v418_v26 }
  0x33   :  { %282 = vmatmul.f32.vlgmr.msra.gmra.mxu2 %v418_v26 }
  0x39   :  { %259 = vmatmul.f32.vlgmr.msra.gmra.mxu1 %v417_v20 }
  0x9e   :  { %v59_v27 = vpop.f32.mrf.mxu0 }
  0xa4   :  { %v127_v28 = vpop.f32.mrf.mxu3 }
  0xa6   :  { %v84_v29 = vpop.f32.mrf.mxu1  ;;  %v106_v30 = vpop.f32.mrf.mxu2 }
  0xa7   :  { %v85_v31 = vadd.f32 %v84_v29, %v59_v27  ;;  %v150_v32 = vpop.f32.mrf.mxu0 }
  0xa9   :  { %v107_v33 = vadd.f32 %v106_v30, %v85_v31 }
  0xab   :  { %v128_v34 = vadd.f32 %v127_v28, %v107_v33 }
  0xad   :  { %v151_v35 = vadd.f32 %v150_v32, %v128_v34  ;;  %v217_v36 = vpop.f32.mrf.mxu3 }
  0xae   :  { %v171_v37 = vpop.f32.mrf.mxu1  ;;  %v192_v38 = vpop.f32.mrf.mxu2 }
  0xaf   :  { %v172_v40 = vadd.f32 %v171_v37, %v151_v35  ;;  %v239_v42 = vpop.f32.mrf.mxu0 }
  0xb1   :  { %v193_v41 = vadd.f32 %v192_v38, %v172_v40 }
  0xb3   :  { %v218_v44 = vadd.f32 %v217_v36, %v193_v41 }
  0xb5   :  { %v240_v45 = vadd.f32 %v239_v42, %v218_v44  ;;  %v304_v50 = vpop.f32.mrf.mxu3 }
  0xb6   :  { %v260_v46 = vpop.f32.mrf.mxu1  ;;  %v283_v47 = vpop.f32.mrf.mxu2 }
  0xb7   :  { %v261_v49 = vadd.f32 %v260_v46, %v240_v45 }
  0xb9   :  { %v284_v51 = vadd.f32 %v283_v47, %v261_v49 }
  0xbb   :  { %v305_v53 = vadd.f32 %v304_v50, %v284_v51 }
  0xbd   :  { %v307_v54 = vmul.f32 0.00390625, %v305_v53 }
  0xbf   :  { %360 = vlog2.f32 %v307_v54 }
  0xc5   :  { %v361_v60 = vpop.eup %360 }
  0xc6   :  { %v309_v62 = vmul.f32 0.6931472, %v361_v60 }
  0xc8   :  { %v324_v63 = vmul.f32 %v323_v61, %v309_v62 }
  0xca   :  { %v325_v0 = vmul.f32 1.442695, %v324_v63 }
  0xcc   :  { %362 = vpow2.f32 %v325_v0 }
  0xd2   :  { %v363_v1 = vpop.eup %362 }
  0xd3   :  { %328 = vst.msk [vmem:[#allocation7] sm:$0x1] %vm327_vm4, %v363_v1 }
  0xd4   :  { %339 = dma.vmem_to_hbm [thread:$0]  %s335_s1, 16, %s337_s18, [#allocation6]  }
  0xd5   :  { %414 = dma.done.wait [#allocation6], 16  }
  0xd6   :  { %415 = vsyncadd [#allocation6], 4294967280 }
  0xd7   :  { %344 = vsyncpa [#allocation5], 1 }
  0xd8   :  { %345 = vsyncpa [#allocation6], 1 }

</bundles_post_ra>
